<compile_context>
chip_gen: v6e
topology: v6e:2x2x1
jax: 0.10.0
libtpu: 0.0.40
codegen_flags: <defaults>
</compile_context>

<pallas_src>
import math

import jax
import jax.numpy as jnp
from jax import lax
from jax.experimental import pallas as pl
from jax.experimental.pallas import tpu as pltpu


def _enhanced_attn_kernel(x_ref, w_ref, vec_ref, o_ref):
    # x_ref:   (Bt, 1, L)      input slab, L lane-dense
    # w_ref:   (2H+16, H+1)    fused [scale*Wq|scale*bq ; Wk|bk ; wls@Wv|wls@bv ; 0*7 ;
    #                                 W_out|b_out ; 0*7]   (special rows 8-aligned)
    # vec_ref: (H+1, 2)        col 0: input-conv weight (+0), col 1: input-conv bias (+1)
    # o_ref:   (Bt, 1, L)      output slab, L lane-dense
    H = vec_ref.shape[0] - 1
    Bt = x_ref.shape[0]

    vec = vec_ref[...]                    # hoisted: loaded once per grid step
    w = w_ref[...]
    w_in = vec[:, 0:1]                    # (H+1, 1)  input conv weight (row H = 0)
    b_in = vec[:, 1:2]                    # (H+1, 1)  input conv bias   (row H = 1 -> ones channel)

    for b in range(Bt):                   # static unroll over folded batch elements (Bt small)
        x = x_ref[b]                      # (1, L)

        # input 1x1 conv (C_in == 1): per-channel scale + bias + ReLU (pure VPU broadcast).
        # Row H is an all-ones channel so every bias folds into the matmul below.
        x_in_aug = jnp.maximum(w_in * x + b_in, 0.0)                        # (H+1, L)

        # one fused MXU matmul: scaled-Q, K, layer-scaled V-projection row, residual row
        proj = jnp.dot(w, x_in_aug, preferred_element_type=jnp.float32)     # (2H+16, L)
        q = proj[0:H]                     # (H, L)   already scaled by 1/sqrt(key_dim)
        k = proj[H:2 * H]                 # (H, L)
        vproj = proj[2 * H:2 * H + 1]     # (1, L)   = (w_out*layer_scale)^T V
        base = proj[2 * H + 8:2 * H + 9]  # (1, L)   = w_out^T x_in + b_out

        # scores[l, m] = sum_h q[h, l] * k[h, m]   (contract channels, no explicit .T)
        scores = lax.dot_general(q, k, (((0,), (0,)), ((), ())),
                                 preferred_element_type=jnp.float32)        # (L, L)
        scores = scores - jnp.max(scores, axis=-1, keepdims=True)
        p = jnp.exp(scores)
        attn = p * pl.reciprocal(jnp.sum(p, axis=-1, keepdims=True), approx=True)

        # out_attn[l] = sum_m vproj[m] * attn[l, m]   -> (1, L), lane-dense
        out_attn = lax.dot_general(vproj, attn, (((1,), (1,)), ((), ())),
                                   preferred_element_type=jnp.float32)      # (1, L)

        o_ref[b] = (base + out_attn).astype(o_ref.dtype)


def _pick_batch_tile(B, max_tile=8):
    """Fold up to max_tile batch elements per grid step, but keep >= 2 grid steps when
    possible so both v7x TensorCores get work (v5e/v6e: single TC, any grid is fine)."""
    best = 1
    for bt in range(1, min(B, max_tile) + 1):
        if B % bt == 0 and B // bt >= 2:
            best = bt
    return best


def enhanced_attention_forward(x_ncw, params, batch_tile=None):
    """x_ncw: (B, 1, L) float32, NCW like PyTorch Conv1d. Returns (B, 1, L)."""
    B, Cin, L = x_ncw.shape
    assert Cin == 1, "EnhancedAttentionModel takes a single input channel"
    w_fused, vec = params["w_fused"], params["vec"]
    Hp1 = vec.shape[0]

    bt = batch_tile if batch_tile is not None else _pick_batch_tile(B)
    assert B % bt == 0
    grid = (B // bt,)

    return pl.pallas_call(
        _enhanced_attn_kernel,
        out_shape=jax.ShapeDtypeStruct((B, 1, L), x_ncw.dtype),
        grid_spec=pltpu.PrefetchScalarGridSpec(
            num_scalar_prefetch=0,
            grid=grid,
            in_specs=[
                pl.BlockSpec((bt, 1, L), lambda b: (b, 0, 0)),               # x, L on lanes
                pl.BlockSpec((w_fused.shape[0], Hp1), lambda b: (0, 0)),     # fused weights (resident)
                pl.BlockSpec((Hp1, vec.shape[1]), lambda b: (0, 0)),         # input-conv vectors (resident)
            ],
            out_specs=pl.BlockSpec((bt, 1, L), lambda b: (b, 0, 0)),         # lane-dense output
        ),
        compiler_params=pltpu.CompilerParams(
            dimension_semantics=("parallel",),
        ),
    )(x_ncw, w_fused, vec)


def init_params(key, hidden_channels=32, layer_scale_init_value=1e-5):
    """PyTorch-shaped (Conv1d) parameters, deterministic."""
    H = hidden_channels
    ks = jax.random.split(key, 10)

    def uni(k, shape, fan_in):
        bound = 1.0 / math.sqrt(fan_in)
        return jax.random.uniform(k, shape, jnp.float32, -bound, bound)

    return {
        "w_in": uni(ks[0], (H, 1, 1), 1),      # Conv1d(1, H, 1)
        "b_in": uni(ks[1], (H,), 1),
        "w_q":  uni(ks[2], (H, H, 1), H),      # Conv1d(H, H, 1) x3
        "b_q":  uni(ks[3], (H,), H),
        "w_k":  uni(ks[4], (H, H, 1), H),
        "b_k":  uni(ks[5], (H,), H),
        "w_v":  uni(ks[6], (H, H, 1), H),
        "b_v":  uni(ks[7], (H,), H),
        "w_out": uni(ks[8], (1, H, 1), H),     # Conv1d(H, 1, 1)
        "b_out": uni(ks[9], (1,), H),
        "layer_scale": jnp.full((H,), layer_scale_init_value, jnp.float32),
    }


def pack_params(raw):
    """Pack PyTorch-shaped params into the two arrays the kernel consumes.

    Folds (a) 1/sqrt(key_dim) into Wq/bq, (b) output conv + layer-scale through the value
    projection (eval-mode dropout = identity), (c) the residual/output-conv path into one
    extra matmul row, (d) every bias into an all-ones channel column.
    """
    H = raw["w_q"].shape[0]
    f32 = jnp.float32
    scale = 1.0 / math.sqrt(H)                 # key_dim == hidden_channels

    wq, wk, wv = raw["w_q"][:, :, 0], raw["w_k"][:, :, 0], raw["w_v"][:, :, 0]
    bq, bk, bv = raw["b_q"], raw["b_k"], raw["b_v"]
    w_out = raw["w_out"][0, :, 0]              # (H,)
    b_out = raw["b_out"]                       # (1,)
    wls = w_out * raw["layer_scale"]           # (H,)

    q_rows = jnp.concatenate([wq, bq[:, None]], axis=1) * scale            # (H, H+1)
    k_rows = jnp.concatenate([wk, bk[:, None]], axis=1)                    # (H, H+1)
    v_row = jnp.concatenate([wls @ wv, (wls @ bv)[None]])[None, :]         # (1, H+1)
    base_row = jnp.concatenate([w_out, b_out])[None, :]                    # (1, H+1)
    zeros7 = jnp.zeros((7, H + 1), f32)
    w_fused = jnp.concatenate(
        [q_rows, k_rows, v_row, zeros7, base_row, zeros7], axis=0).astype(f32)  # (2H+16, H+1)

    zero = jnp.zeros((1,), f32)
    one = jnp.ones((1,), f32)
    vec = jnp.stack(
        [
            jnp.concatenate([raw["w_in"][:, 0, 0], zero]),   # col 0: input conv weight (+0)
            jnp.concatenate([raw["b_in"], one]),             # col 1: input conv bias (+1 -> ones channel)
        ],
        axis=1,
    ).astype(f32)                                            # (H+1, 2)
    return {"w_fused": w_fused, "vec": vec}


def _reference_forward(x_ncw, raw):
    """Pure-JAX reference mirroring the PyTorch forward (eval mode)."""
    H = raw["w_q"].shape[0]

    def conv1x1(x, w, b):  # x: (B, Cin, L), w: (Cout, Cin, 1), b: (Cout,)
        return jnp.einsum("oi,bil->bol", w[:, :, 0], x) + b[None, :, None]

    x_in = jax.nn.relu(conv1x1(x_ncw, raw["w_in"], raw["b_in"]))
    q = conv1x1(x_in, raw["w_q"], raw["b_q"])
    k = conv1x1(x_in, raw["w_k"], raw["b_k"])
    v = conv1x1(x_in, raw["w_v"], raw["b_v"])
    scores = jnp.einsum("bhl,bhm->blm", q, k) / math.sqrt(H)
    attn = jax.nn.softmax(scores, axis=-1)
    attn_out = jnp.einsum("bhm,blm->bhl", v, attn)
    x_out = x_in + raw["layer_scale"][None, :, None] * attn_out
    return conv1x1(x_out, raw["w_out"], raw["b_out"])


if __name__ == "__main__":
    B, H, L = 2, 32, 16
    key = jax.random.PRNGKey(0)
    kx, kp = jax.random.split(key)
    x = jax.random.normal(kx, (B, 1, L), jnp.float32)   # NCW, like PyTorch Conv1d input
    raw = init_params(kp, hidden_channels=H)
    params = pack_params(raw)

    out = enhanced_attention_forward(x, params)
    out = jax.block_until_ready(out)

    ref = _reference_forward(x, raw)
    assert out.shape == (B, 1, L)
    assert jnp.allclose(out, ref, atol=1e-4, rtol=1e-4), "mismatch vs reference"
    print("KERNEL_OK")
</pallas_src>

<mosaic_0001>
module attributes {stable_mosaic.version = 11 : i64} {
  func.func @_enhanced_attn_kernel(%arg0: i32, %arg1: memref<1x1x16xf32, #tpu.memory_space<vmem>>, %arg2: memref<80x33xf32, #tpu.memory_space<vmem>>, %arg3: memref<33x2xf32, #tpu.memory_space<vmem>>, %arg4: memref<1x1x16xf32, #tpu.memory_space<vmem>>) attributes {dimension_semantics = [#tpu.dimension_semantics<parallel>], iteration_bounds = array<i64: 2>, scalar_prefetch = 0 : i64, scratch_operands = 0 : i64, tpu.core_type = #tpu.core_type<tc>, window_params = [{transform_indices = @transform_0, window_bounds = array<i64: 1, 1, 16>}, {pipeline_mode = #tpu.pipeline_mode<synchronous>, transform_indices = @transform_1, window_bounds = array<i64: 80, 33>}, {pipeline_mode = #tpu.pipeline_mode<synchronous>, transform_indices = @transform_2, window_bounds = array<i64: 33, 2>}, {transform_indices = @transform_3, window_bounds = array<i64: 1, 1, 16>}]} {
    %c0 = arith.constant 0 : index
    %c0_0 = arith.constant 0 : index
    %0 = vector.load %arg3[%c0, %c0_0] : memref<33x2xf32, #tpu.memory_space<vmem>>, vector<33x2xf32>
    %c0_1 = arith.constant 0 : index
    %c0_2 = arith.constant 0 : index
    %1 = vector.load %arg2[%c0_1, %c0_2] : memref<80x33xf32, #tpu.memory_space<vmem>>, vector<80x33xf32>
    %2 = vector.extract_strided_slice %0 {offsets = [0, 0], sizes = [33, 1], strides = [1, 1]} : vector<33x2xf32> to vector<33x1xf32>
    %3 = vector.extract_strided_slice %0 {offsets = [0, 1], sizes = [33, 1], strides = [1, 1]} : vector<33x2xf32> to vector<33x1xf32>
    %c0_3 = arith.constant 0 : index
    %c0_4 = arith.constant 0 : index
    %c0_5 = arith.constant 0 : index
    %4 = vector.load %arg1[%c0_3, %c0_4, %c0_5] : memref<1x1x16xf32, #tpu.memory_space<vmem>>, vector<1x1x16xf32>
    %5 = vector.shape_cast %4 : vector<1x1x16xf32> to vector<1x16xf32>
    %6 = vector.broadcast %2 : vector<33x1xf32> to vector<33x16xf32>
    %7 = vector.broadcast %5 : vector<1x16xf32> to vector<33x16xf32>
    %8 = arith.mulf %6, %7 : vector<33x16xf32>
    %9 = vector.broadcast %3 : vector<33x1xf32> to vector<33x16xf32>
    %10 = arith.addf %8, %9 : vector<33x16xf32>
    %cst = arith.constant 0.000000e+00 : f32
    %11 = vector.broadcast %cst : f32 to vector<33x16xf32>
    %12 = arith.maximumf %10, %11 : vector<33x16xf32>
    %cst_6 = arith.constant dense<0.000000e+00> : vector<80x16xf32>
    %13 = tpu.matmul %1, %12, %cst_6 {dimension_numbers = #tpu.dot_dimension_numbers<[1], [0], [0], [1], [0, 0, 1, 1], [], []>} : vector<80x33xf32>, vector<33x16xf32>, vector<80x16xf32> -> vector<80x16xf32>
    %14 = vector.extract_strided_slice %13 {offsets = [0, 0], sizes = [32, 16], strides = [1, 1]} : vector<80x16xf32> to vector<32x16xf32>
    %15 = vector.extract_strided_slice %13 {offsets = [32, 0], sizes = [32, 16], strides = [1, 1]} : vector<80x16xf32> to vector<32x16xf32>
    %16 = vector.extract_strided_slice %13 {offsets = [64, 0], sizes = [1, 16], strides = [1, 1]} : vector<80x16xf32> to vector<1x16xf32>
    %17 = vector.extract_strided_slice %13 {offsets = [72, 0], sizes = [1, 16], strides = [1, 1]} : vector<80x16xf32> to vector<1x16xf32>
    %cst_7 = arith.constant dense<0.000000e+00> : vector<16x16xf32>
    %18 = tpu.matmul %14, %15, %cst_7 {dimension_numbers = #tpu.dot_dimension_numbers<[0], [0], [1], [1], [0, 1, 1, 1], [], []>} : vector<32x16xf32>, vector<32x16xf32>, vector<16x16xf32> -> vector<16x16xf32>
    %cst_8 = arith.constant dense<0xFF800000> : vector<16xf32>
    %19 = vector.multi_reduction <maximumf>, %18, %cst_8 [1] : vector<16x16xf32> to vector<16xf32>
    %20 = vector.shape_cast %19 : vector<16xf32> to vector<16x1xf32>
    %21 = vector.broadcast %20 : vector<16x1xf32> to vector<16x16xf32>
    %22 = arith.subf %18, %21 : vector<16x16xf32>
    %23 = math.exp %22 : vector<16x16xf32>
    %cst_9 = arith.constant dense<0.000000e+00> : vector<16xf32>
    %24 = vector.multi_reduction <add>, %23, %cst_9 [1] : vector<16x16xf32> to vector<16xf32>
    %25 = vector.shape_cast %24 : vector<16xf32> to vector<16x1xf32>
    %26 = tpu.reciprocal %25 {approx = true} : vector<16x1xf32> -> vector<16x1xf32>
    %27 = vector.broadcast %26 : vector<16x1xf32> to vector<16x16xf32>
    %28 = arith.mulf %23, %27 : vector<16x16xf32>
    %cst_10 = arith.constant dense<0.000000e+00> : vector<1x16xf32>
    %29 = tpu.matmul %16, %28, %cst_10 {dimension_numbers = #tpu.dot_dimension_numbers<[1], [1], [0], [0], [0, 0, 1, 0], [], []>} : vector<1x16xf32>, vector<16x16xf32>, vector<1x16xf32> -> vector<1x16xf32>
    %30 = arith.addf %17, %29 : vector<1x16xf32>
    %c0_11 = arith.constant 0 : index
    %c0_12 = arith.constant 0 : index
    %c0_13 = arith.constant 0 : index
    %31 = vector.load %arg4[%c0_11, %c0_12, %c0_13] : memref<1x1x16xf32, #tpu.memory_space<vmem>>, vector<1x1x16xf32>
    %32 = vector.shape_cast %31 : vector<1x1x16xf32> to vector<1x16xf32>
    %33 = vector.shape_cast %30 : vector<1x16xf32> to vector<1x1x16xf32>
    tpu.vector_store %arg4[%c0_11, %c0_12, %c0_13], %33 {strides = array<i32>} : memref<1x1x16xf32, #tpu.memory_space<vmem>>, vector<1x1x16xf32>,
    return
  }
  func.func @transform_0(%arg0: i32) -> (i32, i32, i32) {
    %c0_i32 = arith.constant 0 : i32
    %c0_i32_0 = arith.constant 0 : i32
    %c0_i32_1 = arith.constant 0 : i32
    return %arg0, %c0_i32, %c0_i32_0 : i32, i32, i32
  }
  func.func @transform_1(%arg0: i32) -> (i32, i32) {
    %c0_i32 = arith.constant 0 : i32
    %c0_i32_0 = arith.constant 0 : i32
    %c0_i32_1 = arith.constant 0 : i32
    return %c0_i32, %c0_i32_0 : i32, i32
  }
  func.func @transform_2(%arg0: i32) -> (i32, i32) {
    %c0_i32 = arith.constant 0 : i32
    %c0_i32_0 = arith.constant 0 : i32
    %c0_i32_1 = arith.constant 0 : i32
    return %c0_i32, %c0_i32_0 : i32, i32
  }
  func.func @transform_3(%arg0: i32) -> (i32, i32, i32) {
    %c0_i32 = arith.constant 0 : i32
    %c0_i32_0 = arith.constant 0 : i32
    %c0_i32_1 = arith.constant 0 : i32
    return %arg0, %c0_i32, %c0_i32_0 : i32, i32, i32
  }
}

</mosaic_0001>

<bundles_post_ra>
// kernel: tpu_custom_call.1
= control target key start
LH: loop header
LB: loop body
LE: loop exit
PB: predicated region body
PF: predicated region fallthrough
CT: control target
= control target key end

     0   :  { %8 = vsyncpa [#allocation3], 0  ;;  %s1073_s0 = inlined_call_operand.vmem [shape: f32[2,1,16], index: 0, kind: input, shape index: {}]   ;;  %s1074_s1 = inlined_call_operand.vmem [shape: f32[80,33], index: 1, kind: input, shape index: {}]   ;;  %s1075_s2 = inlined_call_operand.vmem [shape: f32[33,2], index: 2, kind: input, shape index: {}]   ;;  %s1076_s3 = inlined_call_operand.hbm [shape: f32[2,1,16], index: 3, kind: output, shape index: {}]  }
   0x1   :  { %10 = vsyncpa [#allocation3 + $0x1], 0  ;;  %s914_s12 = smov 0   ;;  %s916_s13 = smov 0  }
   0x2   :  { %s918_s14 = smov 0   ;;  %s920_s15 = smov 0  }
   0x3 LB: > { %s935_s16 = sadd.s32 4294967295, %s887_s15   ;;  %s678_s17 = sadd.s32 4294967294, %s887_s15   ;;  %s887_s15 = sphi %s920_s15, %s1082_s15   ;;  %s883_s14 = sphi %s918_s14, %s1081_s14   ;;  %s879_s13 = sphi %s916_s13, %s1080_s13   ;;  %s875_s12 = sphi %s914_s12, %s1079_s12  }
   0x4   : > { %s939_s18 = sadd.s32 1, %s887_s15   ;;  %s91_s19 = sadd.s32 1, %s883_s14 }
   0x5   : > { %s88_s20 = ssub.s32 %s887_s15, %s939_s18  ;;  %p101_p0 = scmp.ne.s32.totalorder %s883_s14, %s879_s13 }
   0x6   : > { %p89_p1 = scmp.eq.s32.totalorder %s88_s20, 0  ;;  %p102_p2 = scmp.eq.s32.totalorder %s935_s16, 1 }
   0x7   : > { %p107_p3 = scmp.ne.s32.totalorder %s879_s13, %s875_s12  ;;  %p108_p4 = scmp.eq.s32.totalorder %s678_s17, 1 }
   0x8   : > { %s950_s21 = scalar_select %p89_p1, %s883_s14, %s91_s19  }
   0x9   : > { %p952_p5 = por %p102_p2, %p101_p0  ;;  %p956_p6 = por %p108_p4, %p107_p3 }
   0xa   : > { %p681_p7 = scmp.ge.s32.totalorder %s887_s15, 1  ;;  %p138_p8 = scmp.lt.s32.totalorder %s887_s15, 3 }
   0xc   : > { %p139_p9 = pnand %p681_p7, %p138_p8 }
   0xd   : > { %p159_p10 = scmp.lt.s32.totalorder (!%p139_p9), %s935_s16, 1  ;;  %s157_s19 = sand.u32 (!%p139_p9), 1, %s879_s13  }
   0xe   : > { %142 = sbr.rel (%p139_p9) target bundleno = 1217 (0x4c1), region = 32  ;;  %s699_s20 = sshll.u32 (!%p139_p9), %s935_s16, 4 }
   0xf   : > { %s158_s24 = scalar_lea.vmem (!%p139_p9), [#allocation2], %s157_s19  ;;  %s1038_s28 = scalar_lea.hbm (!%p139_p9), %s1076_s3, %s699_s20 }
  0x10   : > { %s626_s25 = sshll.u32 (!%p139_p9), %s158_s24, 4  ;;  %s614_s29 = scalar_lea.sflag (!%p139_p9), [#allocation3], %s157_s19  ;;  %s627_s25 = int_to_ptr.vmem [resolvable:$true] %s626_s25 }
  0x11   : > { %s827_s30 = scalar_lea.vmem (!%p139_p9), %s627_s25, 16 }
  0x12   : > { %p828_p11 = scmp.ne.s32.totalorder (!%p139_p9), %s627_s25, %s827_s30 }
  0x13   : > { %v166_v0 = vld [vmem:[%s1075_s2 + $0x20] sm:$0x1]  ;;  %v889_v1 = vmov 1   ;;  %v890_v2 = vmov 0   ;;  %v165_v3 = vld [vmem:[%s1075_s2 + $0x18] sm:$0xff]  ;;  %v164_v4 = vld [vmem:[%s1075_s2 + $0x10] sm:$0xff] }
  0x14   : > { %813 = vset.pattern.permute.xlu1 %v889_v1  ;;  %812 = vset.pattern.permute.xlu0 %v890_v2  ;;  %v163_v5 = vld [vmem:[%s1075_s2 + $0x8] sm:$0xff]  ;;  %v162_v6 = vld [vmem:[%s1075_s2] sm:$0xff]  ;;  %vm244_vm0 = vcmask 269312   ;;  %s160_s9 = scalar_select %p159_p10, %s935_s16, 1  ;;  %vm275_vm1 = vcmask 1040384   ;;  %v169_v35 = vld [vmem:[%s1074_s1 + $0x10] sm:$0xff] }
  0x15   : > { %231 = vperm.xlu1 %813, %v166_v0   ;;  %200 = vperm.xlu0 %812, %v166_v0   ;;  %v167_v7 = vld [vmem:[%s1074_s1] sm:$0xff]  ;;  %v168_v34 = vld [vmem:[%s1074_s1 + $0x8] sm:$0xff]  ;;  %v170_v36 = vld [vmem:[%s1074_s1 + $0x18] sm:$0xff]  ;;  %vm426_vm2 = vcmask 261120   ;;  %vm508_vm3 = vcmask 130048   ;;  %vm892_vm4 = vmmov 0   ;;  %p829_p12 = pnand %p828_p11, %p952_p5 }
  0x16   : > { %736 = vmatprep.mubr.msk.f32.mxu0 %vm244_vm0, %v167_v7  ;;  %s161_s17 = scalar_lea.vmem %s1073_s0, %s160_s9  ;;  %v171_v37 = vld [vmem:[%s1074_s1 + $0x20] sm:$0xff]  ;;  %v172_v38 = vld [vmem:[%s1074_s1 + $0x28] sm:$0xff]  ;;  %v173_v39 = vld [vmem:[%s1074_s1 + $0x30] sm:$0xff]  ;;  %vm611_vm5 = vcmask 122880   ;;  %s893_s16 = smov [#allocation2]  }
  0x17   : > { %v682_v8 = vld [vmem:[%s161_s17] ss:$0 sm:$0xff]  ;;  %v174_v40 = vld [vmem:[%s1074_s1 + $0x38] sm:$0xff]  ;;  %v176_v52 = vld [vmem:[%s1074_s1 + $0x48] sm:$0xff]  ;;  %p830_p13 = pneg %p829_p12  ;;  %s831_s4 = sshll.u32 %s893_s16, 4  ;;  %s832_s4 = int_to_ptr.vmem [resolvable:$false] %s831_s4 }
  0x18   : > { %v175_v51 = vld [vmem:[%s1074_s1 + $0x40] sm:$0xff]  ;;  %s833_s5 = scalar_lea.vmem %s832_s4, 32  ;;  %p834_p0 = scmp.lt.s32.totalorder %s627_s25, %s832_s4 }
  0x19   : > { %814 = vset.pattern.permute.xlu1 %v890_v2  ;;  %195 = vperm.xlu0 %812, %v165_v3   ;;  %p835_p1 = scmp.lt.s32.totalorder %s833_s5, %s827_s30 }
  0x1a   : > { %190 = vperm.xlu1 %814, %v164_v4  }
  0x1b   : > { %p836_p2 = por %p835_p1, %p834_p0 }
  0x1d   : > { %815 = vset.pattern.permute.xlu0 %v889_v1  ;;  %p837_p3 = pnand %p836_p2, %p830_p13 }
  0x1e   : > { %227 = vperm.xlu0 %815, %v165_v3   ;;  %185 = vperm.xlu1 %814, %v163_v5   ;;  %v891_v3 = vmov 0.0  }
  0x22   : > { %816 = vset.pattern.permute.xlu1 %v889_v1  ;;  %817 = vset.pattern.permute.xlu0 %v890_v2 }
  0x23   : > { %223 = vperm.xlu1 %816, %v164_v4   ;;  %180 = vperm.xlu0 %817, %v162_v6  }
  0x27   : > { %219 = vperm.xlu1 %816, %v163_v5  }
  0x2b   : > { %215 = vperm.xlu1 %816, %v162_v6  }
  0x90   : > { %v232_v9 = vpop.permute.xlu1 %231  ;;  %v201_v10 = vpop.permute.xlu0 %200 }
  0x91   : > { %v213_v11 = vmul.f32 %v682_v8, %v201_v10 }
  0x93   : > { %v238_v12 = vadd.f32 %v232_v9, %v213_v11 }
  0x94   : > { %v196_v13 = vpop.permute.xlu0 %195 }
  0x95   : > { %v191_v14 = vpop.permute.xlu1 %190  ;;  %v243_v15 = vmax.f32 %v238_v12, 0.0  ;;  %v212_v16 = vmul.f32 %v682_v8, %v196_v13 }
  0x96   : > { %v211_v21 = vmul.f32 %v682_v8, %v191_v14 }
  0x97   : > { %726 = vmatprep.subr.msk.mxu0 %vm275_vm1, %v243_v15 }
  0x98   : > { %727 = vmatpush3.msk.msra.mxu0 %vm275_vm1, %v243_v15 }
  0x99   : > { %v228_v17 = vpop.permute.xlu0 %227  ;;  %v186_v18 = vpop.permute.xlu1 %185 }
  0x9a   : > { %v237_v19 = vadd.f32 %v228_v17, %v212_v16  ;;  %v210_v25 = vmul.f32 %v682_v8, %v186_v18 }
  0x9c   : > { %v242_v20 = vmax.f32 %v237_v19, 0.0 }
  0x9e   : > { %v224_v22 = vpop.permute.xlu1 %223  ;;  %728 = vmatprep.subr.mxu0 %v242_v20  ;;  %v181_v24 = vpop.permute.xlu0 %180 }
  0x9f   : > { %v236_v23 = vadd.f32 %v224_v22, %v211_v21  ;;  %729 = vmatpush3.msra.mxu0 %v242_v20  ;;  %v209_v29 = vmul.f32 %v682_v8, %v181_v24 }
  0xa1   : > { %v241_v26 = vmax.f32 %v236_v23, 0.0 }
  0xa2   : > { %v220_v27 = vpop.permute.xlu1 %219 }
  0xa3   : > { %v235_v28 = vadd.f32 %v220_v27, %v210_v25  ;;  %730 = vmatprep.subr.mxu0 %v241_v26 }
  0xa4   : > { %731 = vmatpush3.msra.mxu0 %v241_v26 }
  0xa5   : > { %v240_v30 = vmax.f32 %v235_v28, 0.0 }
  0xa6   : > { %v216_v31 = vpop.permute.xlu1 %215 }
  0xa7   : > { %v234_v32 = vadd.f32 %v216_v31, %v209_v29  ;;  %732 = vmatprep.subr.mxu0 %v240_v30 }
  0xa8   : > { %733 = vmatpush3.msra.mxu0 %v240_v30 }
  0xa9   : > { %v239_v33 = vmax.f32 %v234_v32, 0.0 }
  0xab   : > { %734 = vmatprep.subr.mxu0 %v239_v33 }
  0xac   : > { %735 = vmatpush3.msra.mxu0 %v239_v33 }
  0xad   : > { %737 = vmatmul.mubr.msk.f32.vlgmr.msra.gmra.mxu0 %vm244_vm0, %v168_v34 }
  0xae   : > { %739 = vmatprep.mubr.msk.f32.mxu0 %vm244_vm0, %v169_v35 }
  0xb1   : > { %740 = vmatmul.mubr.msk.f32.gmra.mxu0 %vm244_vm0, %v170_v36 }
  0xb2   : > { %742 = vmatprep.mubr.msk.f32.mxu0 %vm244_vm0, %v171_v37 }
  0xb5   : > { %743 = vmatmul.mubr.msk.f32.gmra.mxu0 %vm244_vm0, %v172_v38 }
  0xb6   : > { %745 = vmatprep.mubr.msk.f32.mxu0 %vm244_vm0, %v173_v39 }
  0xb9   : > { %746 = vmatmul.mubr.msk.f32.gmra.mxu0 %vm244_vm0, %v174_v40 }
  0xba   : > { %748 = vmatprep.mubr.msk.f32.mxu0 %vm244_vm0, %v175_v51 }
  0xbd   : > { %749 = vmatmul.mubr.msk.f32.gmra.mxu0 %vm244_vm0, %v176_v52 }
 0x16d   : > { %v738_v41 = vpop.f32.mrf.mxu0 }
 0x16f   : > { %v345_v42 = vpop.f32.mrf.mxu0 }
 0x170   : > { %394 = vxpose.xlu0.b32.start [1/4] (short) (narrow) %v345_v42, 16 }
 0x171   : > { %v741_v43 = vpop.f32.mrf.mxu0 }
 0x173   : > { %v355_v44 = vpop.f32.mrf.mxu0 }
 0x174   : > { %395 = vxpose.xlu0.b32.cont [2/4] (short) (narrow) %v738_v41, 16 }
 0x175   : > { %v744_v45 = vpop.f32.mrf.mxu0 }
 0x177   : > { %v365_v46 = vpop.f32.mrf.mxu0 }
 0x178   : > { %396 = vxpose.xlu0.b32.cont [3/4] (short) (narrow) %v355_v44, 16 }
 0x179   : > { %v747_v47 = vpop.f32.mrf.mxu0 }
 0x17a   : > { %751 = vmatprep.subr.mxu1 %v747_v47 }
 0x17b   : > { %v375_v48 = vpop.f32.mrf.mxu0  ;;  %752 = vmatpush3.msra.mxu1 %v747_v47 }
 0x17c   : > { %397 = vxpose.xlu0.b32.end [4/4] (short) (narrow) %v741_v43, 16  ;;  %753 = vmatprep.subr.mxu1 %v375_v48 }
 0x17d   : > { %754 = vmatpush3.msra.mxu1 %v375_v48  ;;  %v750_v9 = vpop.f32.mrf.mxu0 }
 0x17e   : > { %755 = vmatprep.subr.mxu1 %v744_v45 }
 0x17f   : > { %756 = vmatpush3.msra.mxu1 %v744_v45  ;;  %v385_v11 = vpop.f32.mrf.mxu0 }
 0x180   : > { %757 = vmatprep.subr.mxu1 %v365_v46 }
 0x181   : > { %758 = vmatpush3.msra.mxu1 %v365_v46 }
 0x182   : > { %762 = vmatprep.subr.mxu1 %v891_v3 }
 0x1a5   : > { %818 = vset.pattern.permute.xlu0 %v889_v1 }
 0x1ec   : > { %v410_v49 = vpop.trf.xlu0 }
 0x1ed   : > { %759 = vmatprep.mubr.msk.f32.mxu1 %vm426_vm2, %v410_v49 }
 0x1f0   : > { %v411_v50 = vpop.trf.xlu0 }
 0x1f1   : > { %760 = vmatmul.mubr.msk.f32.vlgmr.msra.gmra.mxu1 %vm426_vm2, %v411_v50 }
 0x1f2   : > { %766 = vmatprep.mubr.msk.f32.mxu1 %vm892_vm4, %v891_v3 }
 0x2b1   : > { %v761_v53 = vpop.f32.mrf.mxu1 }
 0x2b2   : > { %v512_v54 = vsel %vm508_vm3, %v761_v53, -inf }
 0x2b3   : > { %513 = vmax.xlane.f32.xlu1 %v512_v54  ;;  %v499_v55 = vpop.f32.mrf.mxu1 }
 0x2b4   : > { %v509_v56 = vsel %vm508_vm3, %v499_v55, -inf }
 0x2b7   : > { %510 = vmax.xlane.f32.xlu1 %v509_v56 }
 0x33c   : > { %v514_v57 = vpop.xlane.xlu1 %513 }
 0x33d   : > { %v516_v58 = vsub.f32 %v761_v53, %v514_v57 }
 0x33f   : > { %v519_v59 = vmul.f32 1.442695, %v516_v58 }
 0x340   : > { %v511_v60 = vpop.xlane.xlu1 %510 }
 0x341   : > { %819 = vpow2.f32 %v519_v59  ;;  %v515_v61 = vsub.f32 %v499_v55, %v511_v60 }
 0x343   : > { %v517_v62 = vmul.f32 1.442695, %v515_v61 }
 0x345   : > { %821 = vpow2.f32 %v517_v62 }
 0x34e   : > { %v820_v63 = vpop.eup %819 }
 0x34f   : > { %v524_v0 = vsel %vm508_vm3, %v820_v63, 0.0 }
 0x350   : > { %525 = vadd.xlane.f32.xlu1 %v524_v0 }
 0x352   : > { %v822_v1 = vpop.eup %821 }
 0x353   : > { %v521_v2 = vsel %vm508_vm3, %v822_v1, 0.0 }
 0x354   : > { %522 = vadd.xlane.f32.xlu0 %v521_v2 }
 0x3d9   : > { %v526_v4 = vpop.xlane.xlu1 %525 }
 0x3da   : > { %823 = vrcp.f32 %v526_v4 }
 0x3dd   : > { %v523_v5 = vpop.xlane.xlu0 %522 }
 0x3de   : > { %825 = vrcp.f32 %v523_v5 }
 0x3e7   : > { %v824_v6 = vpop.eup %823 }
 0x3e8   : > { %v530_v7 = vmul.f32 %v824_v6, %v820_v63 }
 0x3ea   : > { %763 = vmatpush3.xpose.msk.msra.mxu1 %vm508_vm3, %v530_v7 }
 0x3eb   : > { %v826_v8 = vpop.eup %825  ;;  %764 = vmatprep.subr.mxu1 %v891_v3 }
 0x3ec   : > { %v529_v10 = vmul.f32 %v826_v8, %v822_v1 }
 0x3ee   : > { %765 = vmatpush3.xpose.msk.msra.mxu1 %vm508_vm3, %v529_v10 }
 0x3f1   : > { %767 = vmatmul.mubr.msk.f32.vlgmr.msra.gmra.mxu1 %vm508_vm3, %v385_v11 }
 0x4b1   : > { %v606_v12 = vpop.f32.mrf.mxu1 }
 0x4b2   : > { %v610_v13 = vadd.f32 %v750_v9, %v606_v12 }
 0x4b3   : > { %v768_v14 = vpop.f32.mrf.mxu1 }
 0x4b4   : > { %612 = vst.msk [vmem:[%s158_s24] sm:$0x1] %vm611_vm5, %v610_v13 }
 0x4b5   : > { %840 = shalt.err (!%p837_p3)
}
 0x4b6   : > { %s841_s6 = scalar_lea.hbm %s1038_s28, 16  ;;  %s845_s9 = scalar_lea.hbm %s1076_s3, 32 }
 0x4b7   : > { %p842_p4 = scmp.ne.s32.totalorder %s1038_s28, %s841_s6  ;;  %p846_p9 = scmp.lt.s32.totalorder %s1038_s28, %s1076_s3 }
 0x4b8   : > { %p847_p10 = scmp.lt.s32.totalorder %s845_s9, %s841_s6 }
 0x4b9   : > { %p843_p7 = pnand %p842_p4, %p952_p5 }
 0x4ba   : > { %p848_p11 = por %p847_p10, %p846_p9 }
 0x4bb   : > { %p844_p8 = pneg %p843_p7 }
 0x4bd   : > { %p849_p12 = pnand %p848_p11, %p844_p8 }
 0x4bf   : > { %852 = shalt.err (!%p849_p12)
}
 0x4c0   : > { %769 = dma.vmem_to_hbm [thread:$0]  (%p952_p5), %s627_s25, 16, %s1038_s28, %s614_s29  }
 0x4c1 PF: > { %p775_p13 = scmp.ge.s32.totalorder %s887_s15, 2  ;;  %s638_s17 = sand.u32 1, %s875_s12  }
 0x4c2   : > { %s639_s19 = scalar_lea.sflag [#allocation3], %s638_s17 }
 0x4c3   : > { %p772_p0 = pnand %p775_p13, %p956_p6 }
 0x4c5   : > { %p773_p1 = pneg %p772_p0 }
 0x4c7   : > { %870 = dma.done.wait (%p773_p1), %s639_s19, 16  }
 0x4c8   : > { %872 = vsyncadd (%p773_p1), %s639_s19, 4294967280  ;;  %p13_p2 = scmp.ge.s32.totalorder %s939_s18, 4   ;;  %s1079_s12 = smov %s879_s13 }
 0x4c9   : > { %s1080_s13 = smov %s883_s14  ;;  %s1081_s14 = smov %s950_s21 }
 0x4ca   : > { %s1082_s15 = smov %s939_s18  ;;  %15 = sbr.rel (!%p13_p2) target bundleno = 3 (0x3), region = 67 }
 0x4cf   :  { %643 = vsyncpa [#allocation3], 1 }
 0x4d0   :  { %645 = vsyncpa [#allocation3 + $0x1], 1 }

</bundles_post_ra>
